<compile_context>
chip_gen: v6e
topology: v6e:2x2x1
jax: 0.10.0
libtpu: 0.0.40
codegen_flags: <defaults>
</compile_context>

<pallas_src>
import functools

import jax
import jax.numpy as jnp
from jax.experimental import pallas as pl
from jax.experimental.pallas import tpu as pltpu

SELU_ALPHA = 1.6732632423543772
SELU_SCALE = 1.0507009873554805
NEG_INF = -1e30


def _round_up(x, m):
    return ((x + m - 1) // m) * m


def _cdiv(a, b):
    return (a + b - 1) // b


# -----------------------------------------------------------------------------
# Fused kernel.  Grid = (batch, seq_tiles, vocab_tiles), vocab innermost.
#   per step : one (TS, Vt) logits tile -> online logsumexp -> stage tile
#   last v   : in-VMEM normalization pass writes the resident (TS, Vp) block
#   last s&v : binding-head MLP from the f32 sum-over-S accumulator
# -----------------------------------------------------------------------------
def _fused_kernel(x_ref, wlm_ref, blm_ref, w1_ref, b1_ref, w2_ref, b2_ref,
                  mlm_ref, bind_ref,
                  z_sc, m_sc, l_sc, xsum_sc,
                  *, inv_s, vt, n_v):
    s = pl.program_id(1)
    v = pl.program_id(2)
    n_s = pl.num_programs(1)

    x_f32 = x_ref[0]                         # (TS, H) f32 (native dtype)
    x_bf16 = x_f32.astype(jnp.bfloat16)      # in-kernel cast, hidden under MXU

    # ---- masked-LM head: one vocab tile, online (flash-style) logsumexp ----
    logits = jnp.dot(x_bf16, wlm_ref[...],
                     preferred_element_type=jnp.float32) + blm_ref[...]  # (TS, Vt)

    @pl.when(v == 0)
    def _():
        m_sc[...] = jnp.full_like(m_sc, NEG_INF)
        l_sc[...] = jnp.zeros_like(l_sc)

    m_prev = m_sc[...]
    m_new = jnp.maximum(m_prev, jnp.max(logits, axis=-1, keepdims=True))
    l_sc[...] = (l_sc[...] * jnp.exp(m_prev - m_new)
                 + jnp.sum(jnp.exp(logits - m_new), axis=-1, keepdims=True))
    m_sc[...] = m_new

    # Stage the raw logits tile (output dtype); normalized once on the last tile.
    z_sc[v] = logits.astype(z_sc.dtype)

    # ---- binding head: accumulate sum over S in f32 (once per seq tile) ----
    @pl.when(jnp.logical_and(s == 0, v == 0))
    def _():
        xsum_sc[...] = jnp.zeros_like(xsum_sc)

    @pl.when(v == 0)
    def _():
        xsum_sc[...] += jnp.sum(x_f32, axis=0, keepdims=True)

    # ---- last vocab tile: second, purely in-VMEM normalization pass ----
    @pl.when(v == n_v - 1)
    def _():
        corr = m_sc[...] + jnp.log(l_sc[...])                 # (TS, 1)
        for vi in range(n_v):                                 # static unroll
            mlm_ref[0, :, vi * vt:(vi + 1) * vt] = (
                z_sc[vi].astype(jnp.float32) - corr).astype(mlm_ref.dtype)

    # ---- last seq tile & last vocab tile: binding-head MLP ----
    @pl.when(jnp.logical_and(s == n_s - 1, v == n_v - 1))
    def _():
        x_mean = xsum_sc[...] * inv_s                                     # (1, H)
        h = jnp.dot(x_mean, w1_ref[...],
                    preferred_element_type=jnp.float32) + b1_ref[...]     # (1, 64)
        # SELU (elementwise, VPU/EUP)
        h = SELU_SCALE * jnp.where(h > 0, h, SELU_ALPHA * (jnp.exp(h) - 1.0))
        # Dropout(0.2) is identity in eval / inference mode.
        # N=1 second matmul as a VPU reduction (no wasted MXU pass).
        y = jnp.sum(h * w2_ref[...], axis=-1, keepdims=True) + b2_ref[...]  # (1,1)
        bind_ref[0] = jnp.broadcast_to(y, bind_ref.shape[1:]).astype(bind_ref.dtype)


# -----------------------------------------------------------------------------
# Wrapper: balanced seq/vocab tiling, padded LM weight/bias, explicit VMEM
# budget + cost estimate.  Generation tuning (review):
#   v5e / v7x : seq_tile=128, vocab_tile=2048 (defaults)
#   v6e       : seq_tile=256 and/or vocab_tile >= vocab_size (w_lm resident)
# -----------------------------------------------------------------------------
def bertlm_pmhc_forward(x, params, *, seq_tile=128, vocab_tile=2048,
                        mlm_dtype=jnp.bfloat16):
    B, S, H = x.shape
    V = params["w_lm"].shape[1]

    # Balanced, 16-aligned seq tiling (bf16 packs 16 sublanes per vreg).
    n_s = _cdiv(S, seq_tile)
    TS = _round_up(_cdiv(S, n_s), 16)
    S_pad = n_s * TS

    # Balanced, 128-lane aligned vocab tiling.
    Vp0 = _round_up(V, 128)
    n_v = _cdiv(Vp0, vocab_tile)
    Vt = _round_up(_cdiv(Vp0, n_v), 128)
    Vp = n_v * Vt

    # x stays in its native dtype; only a ragged seq tail is zero-padded
    # (zero rows yield valid log-softmax rows that get sliced off and do not
    # perturb the sum-over-S because we divide by the true S).
    # TODO(synk): a row-masked ragged-tail variant would avoid even this copy.
    x_in = x if S_pad == S else jnp.pad(x, ((0, 0), (0, S_pad - S), (0, 0)))

    # LM weight in bf16 for the MXU; padded bias columns get -1e30 so padded
    # logits never influence the softmax.
    w_lm = jnp.zeros((H, Vp), jnp.bfloat16).at[:, :V].set(
        params["w_lm"].astype(jnp.bfloat16))
    b_lm = jnp.full((1, Vp), NEG_INF, jnp.float32).at[:, :V].set(
        params["b_lm"].reshape(1, V).astype(jnp.float32))

    w1 = params["w1"].astype(jnp.float32)                    # (H, 64)
    b1 = params["b1"].reshape(1, 64).astype(jnp.float32)     # (1, 64)
    w2 = params["w2"].reshape(1, 64).astype(jnp.float32)     # (64,1) -> (1,64)
    b2 = params["b2"].reshape(1, 1).astype(jnp.float32)      # (1, 1)

    out_bytes = jnp.dtype(mlm_dtype).itemsize
    kernel = functools.partial(_fused_kernel, inv_s=1.0 / S, vt=Vt, n_v=n_v)

    cost = pl.CostEstimate(
        flops=int(2 * B * S_pad * H * Vp + 2 * B * H * 64 + 2 * B * 64),
        transcendentals=int(B * S_pad * Vp + B * S_pad * n_v + B * 64),
        bytes_accessed=int(B * S_pad * H * 4
                           + B * n_s * (H * Vp * 2 + Vp * 4)
                           + B * S_pad * Vp * out_bytes + B * 128 * 4),
    )

    # Explicit VMEM budget (scoped defaults are only 16/32/32 MiB on v5e/v6e/v7x).
    vmem_need = (
        2 * TS * H * 4                        # x tile (double-buffered, f32)
        + 2 * (H * Vt * 2 + Vt * 4)           # streamed w_lm / b_lm tiles
        + n_v * TS * Vt * out_bytes           # staged logits tiles (scratch)
        + 2 * TS * Vp * out_bytes             # resident log-prob output block
        + TS * Vt * 4                         # live f32 logits tile
        + 2 * (H * 64 + 3 * 64) * 4           # binding-head weights
        + (2 * TS + H + 2 * 128) * 4          # m/l/xsum scratch + binding out
    )
    vmem_limit = int(min(max(int(vmem_need * 1.25) + (4 << 20), 32 << 20),
                         100 << 20))

    mlm_pad, bind_pad = pl.pallas_call(
        kernel,
        out_shape=(
            jax.ShapeDtypeStruct((B, S_pad, Vp), mlm_dtype),
            jax.ShapeDtypeStruct((B, 1, 128), jnp.float32),
        ),
        grid=(B, n_s, n_v),
        in_specs=[
            pl.BlockSpec((1, TS, H), lambda b, s, v: (b, s, 0)),   # x (resident over v)
            pl.BlockSpec((H, Vt), lambda b, s, v: (0, v)),         # w_lm (streamed)
            pl.BlockSpec((1, Vt), lambda b, s, v: (0, v)),         # b_lm (streamed)
            pl.BlockSpec((H, 64), lambda b, s, v: (0, 0)),         # w1
            pl.BlockSpec((1, 64), lambda b, s, v: (0, 0)),         # b1
            pl.BlockSpec((1, 64), lambda b, s, v: (0, 0)),         # w2 (row vector)
            pl.BlockSpec((1, 1), lambda b, s, v: (0, 0)),          # b2
        ],
        out_specs=(
            pl.BlockSpec((1, TS, Vp), lambda b, s, v: (b, s, 0)),  # log-probs (resident over v)
            pl.BlockSpec((1, 1, 128), lambda b, s, v: (b, 0, 0)),  # binding (resident over s, v)
        ),
        scratch_shapes=[
            pltpu.VMEM((n_v, TS, Vt), mlm_dtype),   # staged logits tiles
            pltpu.VMEM((TS, 1), jnp.float32),       # running max
            pltpu.VMEM((TS, 1), jnp.float32),       # running sum(exp)
            pltpu.VMEM((1, H), jnp.float32),        # f32 sum over S (binding head)
        ],
        compiler_params=pltpu.CompilerParams(
            dimension_semantics=("parallel", "arbitrary", "arbitrary"),
            vmem_limit_bytes=vmem_limit),
        cost_estimate=cost,
    )(x_in, w_lm, b_lm, w1, b1, w2, b2)

    binding = bind_pad[:, 0, :1]       # (B, 1) float32
    mlm = mlm_pad[:, :S, :V]           # (B, S, V) mlm_dtype
    return binding, mlm


def init_params(key, hidden, vocab_size):
    ks = jax.random.split(key, 6)
    # nn.Linear stores weight as [out, in]; we keep the transposed [in, out]
    # layout so the kernel does x @ W directly (one-time conversion of params).
    return {
        "w1":   jax.random.normal(ks[0], (hidden, 64), jnp.float32) * 0.05,
        "b1":   jax.random.normal(ks[1], (1, 64), jnp.float32) * 0.05,
        "w2":   jax.random.normal(ks[2], (64, 1), jnp.float32) * 0.05,
        "b2":   jax.random.normal(ks[3], (1, 1), jnp.float32) * 0.05,
        "w_lm": jax.random.normal(ks[4], (hidden, vocab_size), jnp.float32) * 0.05,
        "b_lm": jax.random.normal(ks[5], (1, vocab_size), jnp.float32) * 0.05,
    }


if __name__ == "__main__":
    key = jax.random.PRNGKey(0)
    B, S, H, V = 2, 8, 32, 32          # batch, seq, hidden, (amino-acid) vocab

    k_x, k_p = jax.random.split(key)
    # BERT encoder output hidden states (see TODO at top of file).
    x = jax.random.normal(k_x, (B, S, H), jnp.float32)
    params = init_params(k_p, H, V)

    binding, mlm = bertlm_pmhc_forward(x, params)
    jax.block_until_ready(binding)
    jax.block_until_ready(mlm)

    assert binding.shape == (B, 1)
    assert mlm.shape == (B, S, V)

    mlm32 = mlm.astype(jnp.float32)
    # log-softmax rows must (approximately) exponentiate-sum to 1
    assert jnp.allclose(jnp.sum(jnp.exp(mlm32), axis=-1), 1.0, atol=5e-2)

    # Pure-JAX reference (same bf16 rounding of the MXU operands as the kernel).
    xb = x.astype(jnp.bfloat16).astype(jnp.float32)
    wb = params["w_lm"].astype(jnp.bfloat16).astype(jnp.float32)
    ref_mlm = jax.nn.log_softmax(xb @ wb + params["b_lm"], axis=-1)
    xm = jnp.mean(x, axis=1)                              # binding head uses f32 x
    ref_h = jax.nn.selu(xm @ params["w1"] + params["b1"])
    ref_bind = ref_h @ params["w2"] + params["b2"]

    assert jnp.allclose(mlm32, ref_mlm, atol=5e-2, rtol=2e-2)
    assert jnp.allclose(binding, ref_bind, atol=2e-3, rtol=2e-3)

    print("KERNEL_OK")
</pallas_src>

<mosaic_0001>
module attributes {stable_mosaic.version = 11 : i64} {
  func.func @_fused_kernel(%arg0: i32, %arg1: i32, %arg2: i32, %arg3: memref<1x16x32xf32, #tpu.memory_space<vmem>>, %arg4: memref<32x128xbf16, #tpu.memory_space<vmem>>, %arg5: memref<1x128xf32, #tpu.memory_space<vmem>>, %arg6: memref<32x64xf32, #tpu.memory_space<vmem>>, %arg7: memref<1x64xf32, #tpu.memory_space<vmem>>, %arg8: memref<1x64xf32, #tpu.memory_space<vmem>>, %arg9: memref<1x1xf32, #tpu.memory_space<vmem>>, %arg10: memref<1x16x128xbf16, #tpu.memory_space<vmem>>, %arg11: memref<1x1x128xf32, #tpu.memory_space<vmem>>, %arg12: memref<1x16x128xbf16, #tpu.memory_space<vmem>>, %arg13: memref<16x1xf32, #tpu.memory_space<vmem>>, %arg14: memref<16x1xf32, #tpu.memory_space<vmem>>, %arg15: memref<1x32xf32, #tpu.memory_space<vmem>>) attributes {dimension_semantics = [#tpu.dimension_semantics<parallel>, #tpu.dimension_semantics<arbitrary>, #tpu.dimension_semantics<arbitrary>], iteration_bounds = array<i64: 2, 1, 1>, scalar_prefetch = 0 : i64, scratch_operands = 4 : i64, tpu.core_type = #tpu.core_type<tc>, window_params = [{transform_indices = @transform_0, window_bounds = array<i64: 1, 16, 32>}, {transform_indices = @transform_1, window_bounds = array<i64: 32, 128>}, {transform_indices = @transform_2, window_bounds = array<i64: 1, 128>}, {pipeline_mode = #tpu.pipeline_mode<synchronous>, transform_indices = @transform_3, window_bounds = array<i64: 32, 64>}, {pipeline_mode = #tpu.pipeline_mode<synchronous>, transform_indices = @transform_4, window_bounds = array<i64: 1, 64>}, {pipeline_mode = #tpu.pipeline_mode<synchronous>, transform_indices = @transform_5, window_bounds = array<i64: 1, 64>}, {pipeline_mode = #tpu.pipeline_mode<synchronous>, transform_indices = @transform_6, window_bounds = array<i64: 1, 1>}, {transform_indices = @transform_7, window_bounds = array<i64: 1, 16, 128>}, {transform_indices = @transform_8, window_bounds = array<i64: 1, 1, 128>}]} {
    %c0 = arith.constant 0 : index
    %c0_0 = arith.constant 0 : index
    %c0_1 = arith.constant 0 : index
    %0 = vector.load %arg3[%c0, %c0_0, %c0_1] : memref<1x16x32xf32, #tpu.memory_space<vmem>>, vector<1x16x32xf32>
    %1 = vector.shape_cast %0 : vector<1x16x32xf32> to vector<16x32xf32>
    %2 = arith.truncf %1 : vector<16x32xf32> to vector<16x32xbf16>
    %c0_2 = arith.constant 0 : index
    %c0_3 = arith.constant 0 : index
    %3 = vector.load %arg4[%c0_2, %c0_3] : memref<32x128xbf16, #tpu.memory_space<vmem>>, vector<32x128xbf16>
    %cst = arith.constant dense<0.000000e+00> : vector<16x128xf32>
    %4 = tpu.matmul %2, %3, %cst {dimension_numbers = #tpu.dot_dimension_numbers<[1], [0], [0], [1], [0, 0, 1, 1], [], []>} : vector<16x32xbf16>, vector<32x128xbf16>, vector<16x128xf32> -> vector<16x128xf32>
    %c0_4 = arith.constant 0 : index
    %c0_5 = arith.constant 0 : index
    %5 = vector.load %arg5[%c0_4, %c0_5] : memref<1x128xf32, #tpu.memory_space<vmem>>, vector<1x128xf32>
    %6 = vector.broadcast %5 : vector<1x128xf32> to vector<16x128xf32>
    %7 = arith.addf %4, %6 : vector<16x128xf32>
    %c0_i32 = arith.constant 0 : i32
    %8 = arith.cmpi eq, %arg2, %c0_i32 : i32
    %9 = arith.extui %8 : i1 to i32
    %c0_i32_6 = arith.constant 0 : i32
    %10 = arith.cmpi ne, %9, %c0_i32_6 : i32
    scf.if %10 {
      %cst_29 = arith.constant -1.000000e+30 : f32
      %48 = vector.broadcast %cst_29 : f32 to vector<16x1xf32>
      %c0_30 = arith.constant 0 : index
      %c0_31 = arith.constant 0 : index
      %49 = vector.load %arg13[%c0_30, %c0_31] : memref<16x1xf32, #tpu.memory_space<vmem>>, vector<16x1xf32>
      tpu.vector_store %arg13[%c0_30, %c0_31], %48 {strides = array<i32>} : memref<16x1xf32, #tpu.memory_space<vmem>>, vector<16x1xf32>,
      %cst_32 = arith.constant 0.000000e+00 : f32
      %50 = vector.broadcast %cst_32 : f32 to vector<16x1xf32>
      %c0_33 = arith.constant 0 : index
      %c0_34 = arith.constant 0 : index
      %51 = vector.load %arg14[%c0_33, %c0_34] : memref<16x1xf32, #tpu.memory_space<vmem>>, vector<16x1xf32>
      tpu.vector_store %arg14[%c0_33, %c0_34], %50 {strides = array<i32>} : memref<16x1xf32, #tpu.memory_space<vmem>>, vector<16x1xf32>,
    } else {
    }
    %c0_7 = arith.constant 0 : index
    %c0_8 = arith.constant 0 : index
    %11 = vector.load %arg13[%c0_7, %c0_8] : memref<16x1xf32, #tpu.memory_space<vmem>>, vector<16x1xf32>
    %cst_9 = arith.constant dense<0xFF800000> : vector<16xf32>
    %12 = vector.multi_reduction <maximumf>, %7, %cst_9 [1] : vector<16x128xf32> to vector<16xf32>
    %13 = vector.shape_cast %12 : vector<16xf32> to vector<16x1xf32>
    %14 = arith.maximumf %11, %13 : vector<16x1xf32>
    %c0_10 = arith.constant 0 : index
    %c0_11 = arith.constant 0 : index
    %15 = vector.load %arg14[%c0_10, %c0_11] : memref<16x1xf32, #tpu.memory_space<vmem>>, vector<16x1xf32>
    %16 = arith.subf %11, %14 : vector<16x1xf32>
    %17 = math.exp %16 : vector<16x1xf32>
    %18 = arith.mulf %15, %17 : vector<16x1xf32>
    %19 = vector.broadcast %14 : vector<16x1xf32> to vector<16x128xf32>
    %20 = arith.subf %7, %19 : vector<16x128xf32>
    %21 = math.exp %20 : vector<16x128xf32>
    %cst_12 = arith.constant dense<0.000000e+00> : vector<16xf32>
    %22 = vector.multi_reduction <add>, %21, %cst_12 [1] : vector<16x128xf32> to vector<16xf32>
    %23 = vector.shape_cast %22 : vector<16xf32> to vector<16x1xf32>
    %24 = arith.addf %18, %23 : vector<16x1xf32>
    %c0_13 = arith.constant 0 : index
    %c0_14 = arith.constant 0 : index
    %25 = vector.load %arg14[%c0_13, %c0_14] : memref<16x1xf32, #tpu.memory_space<vmem>>, vector<16x1xf32>
    tpu.vector_store %arg14[%c0_13, %c0_14], %24 {strides = array<i32>} : memref<16x1xf32, #tpu.memory_space<vmem>>, vector<16x1xf32>,
    %c0_15 = arith.constant 0 : index
    %c0_16 = arith.constant 0 : index
    %26 = vector.load %arg13[%c0_15, %c0_16] : memref<16x1xf32, #tpu.memory_space<vmem>>, vector<16x1xf32>
    tpu.vector_store %arg13[%c0_15, %c0_16], %14 {strides = array<i32>} : memref<16x1xf32, #tpu.memory_space<vmem>>, vector<16x1xf32>,
    %27 = arith.truncf %7 : vector<16x128xf32> to vector<16x128xbf16>
    %28 = arith.index_cast %arg2 : i32 to index
    %c0_17 = arith.constant 0 : index
    %c0_18 = arith.constant 0 : index
    %29 = vector.load %arg12[%28, %c0_17, %c0_18] : memref<1x16x128xbf16, #tpu.memory_space<vmem>>, vector<1x16x128xbf16>
    %30 = vector.shape_cast %29 : vector<1x16x128xbf16> to vector<16x128xbf16>
    %31 = vector.shape_cast %27 : vector<16x128xbf16> to vector<1x16x128xbf16>
    tpu.vector_store %arg12[%28, %c0_17, %c0_18], %31 {strides = array<i32>} : memref<1x16x128xbf16, #tpu.memory_space<vmem>>, vector<1x16x128xbf16>,
    %c0_i32_19 = arith.constant 0 : i32
    %32 = arith.cmpi eq, %arg1, %c0_i32_19 : i32
    %c0_i32_20 = arith.constant 0 : i32
    %33 = arith.cmpi eq, %arg2, %c0_i32_20 : i32
    %34 = arith.andi %32, %33 : i1
    %35 = arith.extui %34 : i1 to i32
    %c0_i32_21 = arith.constant 0 : i32
    %36 = arith.cmpi ne, %35, %c0_i32_21 : i32
    scf.if %36 {
      %cst_29 = arith.constant 0.000000e+00 : f32
      %48 = vector.broadcast %cst_29 : f32 to vector<1x32xf32>
      %c0_30 = arith.constant 0 : index
      %c0_31 = arith.constant 0 : index
      %49 = vector.load %arg15[%c0_30, %c0_31] : memref<1x32xf32, #tpu.memory_space<vmem>>, vector<1x32xf32>
      tpu.vector_store %arg15[%c0_30, %c0_31], %48 {strides = array<i32>} : memref<1x32xf32, #tpu.memory_space<vmem>>, vector<1x32xf32>,
    } else {
    }
    %c0_i32_22 = arith.constant 0 : i32
    %37 = arith.cmpi eq, %arg2, %c0_i32_22 : i32
    %38 = arith.extui %37 : i1 to i32
    %c0_i32_23 = arith.constant 0 : i32
    %39 = arith.cmpi ne, %38, %c0_i32_23 : i32
    scf.if %39 {
      %c0_29 = arith.constant 0 : index
      %c0_30 = arith.constant 0 : index
      %48 = vector.load %arg15[%c0_29, %c0_30] : memref<1x32xf32, #tpu.memory_space<vmem>>, vector<1x32xf32>
      %cst_31 = arith.constant dense<0.000000e+00> : vector<32xf32>
      %49 = vector.multi_reduction <add>, %1, %cst_31 [0] : vector<16x32xf32> to vector<32xf32>
      %50 = vector.shape_cast %49 : vector<32xf32> to vector<1x32xf32>
      %51 = arith.addf %48, %50 : vector<1x32xf32>
      %c0_32 = arith.constant 0 : index
      %c0_33 = arith.constant 0 : index
      %52 = vector.load %arg15[%c0_32, %c0_33] : memref<1x32xf32, #tpu.memory_space<vmem>>, vector<1x32xf32>
      tpu.vector_store %arg15[%c0_32, %c0_33], %51 {strides = array<i32>} : memref<1x32xf32, #tpu.memory_space<vmem>>, vector<1x32xf32>,
    } else {
    }
    %c0_i32_24 = arith.constant 0 : i32
    %40 = arith.cmpi eq, %arg2, %c0_i32_24 : i32
    %41 = arith.extui %40 : i1 to i32
    %c0_i32_25 = arith.constant 0 : i32
    %42 = arith.cmpi ne, %41, %c0_i32_25 : i32
    scf.if %42 {
      %c0_29 = arith.constant 0 : index
      %c0_30 = arith.constant 0 : index
      %48 = vector.load %arg13[%c0_29, %c0_30] : memref<16x1xf32, #tpu.memory_space<vmem>>, vector<16x1xf32>
      %c0_31 = arith.constant 0 : index
      %c0_32 = arith.constant 0 : index
      %49 = vector.load %arg14[%c0_31, %c0_32] : memref<16x1xf32, #tpu.memory_space<vmem>>, vector<16x1xf32>
      %50 = math.log %49 : vector<16x1xf32>
      %51 = arith.addf %48, %50 : vector<16x1xf32>
      %c0_33 = arith.constant 0 : index
      %c0_34 = arith.constant 0 : index
      %c0_35 = arith.constant 0 : index
      %52 = vector.load %arg12[%c0_33, %c0_34, %c0_35] : memref<1x16x128xbf16, #tpu.memory_space<vmem>>, vector<1x16x128xbf16>
      %53 = vector.shape_cast %52 : vector<1x16x128xbf16> to vector<16x128xbf16>
      %54 = arith.extf %53 : vector<16x128xbf16> to vector<16x128xf32>
      %55 = vector.broadcast %51 : vector<16x1xf32> to vector<16x128xf32>
      %56 = arith.subf %54, %55 : vector<16x128xf32>
      %57 = arith.truncf %56 : vector<16x128xf32> to vector<16x128xbf16>
      %c0_36 = arith.constant 0 : index
      %c0_37 = arith.constant 0 : index
      %c0_38 = arith.constant 0 : index
      %58 = vector.load %arg10[%c0_36, %c0_37, %c0_38] : memref<1x16x128xbf16, #tpu.memory_space<vmem>>, vector<1x16x128xbf16>
      %59 = vector.shape_cast %58 : vector<1x16x128xbf16> to vector<16x128xbf16>
      %60 = vector.shape_cast %57 : vector<16x128xbf16> to vector<1x16x128xbf16>
      tpu.vector_store %arg10[%c0_36, %c0_37, %c0_38], %60 {strides = array<i32>} : memref<1x16x128xbf16, #tpu.memory_space<vmem>>, vector<1x16x128xbf16>,
    } else {
    }
    %c0_i32_26 = arith.constant 0 : i32
    %43 = arith.cmpi eq, %arg1, %c0_i32_26 : i32
    %c0_i32_27 = arith.constant 0 : i32
    %44 = arith.cmpi eq, %arg2, %c0_i32_27 : i32
    %45 = arith.andi %43, %44 : i1
    %46 = arith.extui %45 : i1 to i32
    %c0_i32_28 = arith.constant 0 : i32
    %47 = arith.cmpi ne, %46, %c0_i32_28 : i32
    scf.if %47 {
      %c0_29 = arith.constant 0 : index
      %c0_30 = arith.constant 0 : index
      %48 = vector.load %arg15[%c0_29, %c0_30] : memref<1x32xf32, #tpu.memory_space<vmem>>, vector<1x32xf32>
      %cst_31 = arith.constant 1.250000e-01 : f32
      %49 = vector.broadcast %cst_31 : f32 to vector<1x32xf32>
      %50 = arith.mulf %48, %49 : vector<1x32xf32>
      %c0_32 = arith.constant 0 : index
      %c0_33 = arith.constant 0 : index
      %51 = vector.load %arg6[%c0_32, %c0_33] : memref<32x64xf32, #tpu.memory_space<vmem>>, vector<32x64xf32>
      %cst_34 = arith.constant dense<0.000000e+00> : vector<1x64xf32>
      %52 = tpu.matmul %50, %51, %cst_34 {dimension_numbers = #tpu.dot_dimension_numbers<[1], [0], [0], [1], [0, 0, 1, 1], [], []>} : vector<1x32xf32>, vector<32x64xf32>, vector<1x64xf32> -> vector<1x64xf32>
      %c0_35 = arith.constant 0 : index
      %c0_36 = arith.constant 0 : index
      %53 = vector.load %arg7[%c0_35, %c0_36] : memref<1x64xf32, #tpu.memory_space<vmem>>, vector<1x64xf32>
      %54 = arith.addf %52, %53 : vector<1x64xf32>
      %cst_37 = arith.constant 0.000000e+00 : f32
      %55 = vector.broadcast %cst_37 : f32 to vector<1x64xf32>
      %56 = arith.cmpf ogt, %54, %55 : vector<1x64xf32>
      %57 = math.exp %54 : vector<1x64xf32>
      %cst_38 = arith.constant 1.000000e+00 : f32
      %58 = vector.broadcast %cst_38 : f32 to vector<1x64xf32>
      %59 = arith.subf %57, %58 : vector<1x64xf32>
      %cst_39 = arith.constant 1.67326319 : f32
      %60 = vector.broadcast %cst_39 : f32 to vector<1x64xf32>
      %61 = arith.mulf %60, %59 : vector<1x64xf32>
      %62 = arith.select %56, %54, %61 : vector<1x64xi1>, vector<1x64xf32>
      %cst_40 = arith.constant 1.05070102 : f32
      %63 = vector.broadcast %cst_40 : f32 to vector<1x64xf32>
      %64 = arith.mulf %63, %62 : vector<1x64xf32>
      %c0_41 = arith.constant 0 : index
      %c0_42 = arith.constant 0 : index
      %65 = vector.load %arg8[%c0_41, %c0_42] : memref<1x64xf32, #tpu.memory_space<vmem>>, vector<1x64xf32>
      %66 = arith.mulf %64, %65 : vector<1x64xf32>
      %cst_43 = arith.constant dense<0.000000e+00> : vector<1xf32>
      %67 = vector.multi_reduction <add>, %66, %cst_43 [1] : vector<1x64xf32> to vector<1xf32>
      %68 = vector.shape_cast %67 : vector<1xf32> to vector<1x1xf32>
      %c0_44 = arith.constant 0 : index
      %c0_45 = arith.constant 0 : index
      %69 = vector.load %arg9[%c0_44, %c0_45] : memref<1x1xf32, #tpu.memory_space<vmem>>, vector<1x1xf32>
      %70 = arith.addf %68, %69 : vector<1x1xf32>
      %71 = vector.shape_cast %70 : vector<1x1xf32> to vector<1x1xf32>
      %72 = vector.broadcast %71 : vector<1x1xf32> to vector<1x128xf32>
      %c0_46 = arith.constant 0 : index
      %c0_47 = arith.constant 0 : index
      %c0_48 = arith.constant 0 : index
      %73 = vector.load %arg11[%c0_46, %c0_47, %c0_48] : memref<1x1x128xf32, #tpu.memory_space<vmem>>, vector<1x1x128xf32>
      %74 = vector.shape_cast %73 : vector<1x1x128xf32> to vector<1x128xf32>
      %75 = vector.shape_cast %72 : vector<1x128xf32> to vector<1x1x128xf32>
      tpu.vector_store %arg11[%c0_46, %c0_47, %c0_48], %75 {strides = array<i32>} : memref<1x1x128xf32, #tpu.memory_space<vmem>>, vector<1x1x128xf32>,
    } else {
    }
    return
  }
  func.func @transform_0(%arg0: i32, %arg1: i32, %arg2: i32) -> (i32, i32, i32) {
    %c0_i32 = arith.constant 0 : i32
    %c0_i32_0 = arith.constant 0 : i32
    return %arg0, %arg1, %c0_i32 : i32, i32, i32
  }
  func.func @transform_1(%arg0: i32, %arg1: i32, %arg2: i32) -> (i32, i32) {
    %c0_i32 = arith.constant 0 : i32
    %c0_i32_0 = arith.constant 0 : i32
    return %c0_i32, %arg2 : i32, i32
  }
  func.func @transform_2(%arg0: i32, %arg1: i32, %arg2: i32) -> (i32, i32) {
    %c0_i32 = arith.constant 0 : i32
    %c0_i32_0 = arith.constant 0 : i32
    return %c0_i32, %arg2 : i32, i32
  }
  func.func @transform_3(%arg0: i32, %arg1: i32, %arg2: i32) -> (i32, i32) {
    %c0_i32 = arith.constant 0 : i32
    %c0_i32_0 = arith.constant 0 : i32
    %c0_i32_1 = arith.constant 0 : i32
    return %c0_i32, %c0_i32_0 : i32, i32
  }
  func.func @transform_4(%arg0: i32, %arg1: i32, %arg2: i32) -> (i32, i32) {
    %c0_i32 = arith.constant 0 : i32
    %c0_i32_0 = arith.constant 0 : i32
    %c0_i32_1 = arith.constant 0 : i32
    return %c0_i32, %c0_i32_0 : i32, i32
  }
  func.func @transform_5(%arg0: i32, %arg1: i32, %arg2: i32) -> (i32, i32) {
    %c0_i32 = arith.constant 0 : i32
    %c0_i32_0 = arith.constant 0 : i32
    %c0_i32_1 = arith.constant 0 : i32
    return %c0_i32, %c0_i32_0 : i32, i32
  }
  func.func @transform_6(%arg0: i32, %arg1: i32, %arg2: i32) -> (i32, i32) {
    %c0_i32 = arith.constant 0 : i32
    %c0_i32_0 = arith.constant 0 : i32
    %c0_i32_1 = arith.constant 0 : i32
    return %c0_i32, %c0_i32_0 : i32, i32
  }
  func.func @transform_7(%arg0: i32, %arg1: i32, %arg2: i32) -> (i32, i32, i32) {
    %c0_i32 = arith.constant 0 : i32
    %c0_i32_0 = arith.constant 0 : i32
    return %arg0, %arg1, %c0_i32 : i32, i32, i32
  }
  func.func @transform_8(%arg0: i32, %arg1: i32, %arg2: i32) -> (i32, i32, i32) {
    %c0_i32 = arith.constant 0 : i32
    %c0_i32_0 = arith.constant 0 : i32
    %c0_i32_1 = arith.constant 0 : i32
    return %arg0, %c0_i32, %c0_i32_0 : i32, i32, i32
  }
}

</mosaic_0001>

<bundles_post_ra>
// kernel: tpu_custom_call.1
= control target key start
LH: loop header
LB: loop body
LE: loop exit
PB: predicated region body
PF: predicated region fallthrough
CT: control target
= control target key end

     0   :  { %s1615_s0 = inlined_call_operand.hbm [shape: f32[2,16,32], index: 0, kind: input, shape index: {}]   ;;  %s1616_s1 = inlined_call_operand.hbm [shape: bf16[32,128], index: 1, kind: input, shape index: {}]   ;;  %s1617_s2 = inlined_call_operand.vmem [shape: f32[1,128], index: 2, kind: input, shape index: {}]   ;;  %s1618_s3 = inlined_call_operand.hbm [shape: f32[32,64], index: 3, kind: input, shape index: {}]   ;;  %s1619_s4 = inlined_call_operand.vmem [shape: f32[1,64], index: 4, kind: input, shape index: {}]   ;;  %s1620_s5 = inlined_call_operand.vmem [shape: f32[1,64], index: 5, kind: input, shape index: {}]   ;;  %s1621_s6 = inlined_call_operand.<no memory space> [shape: f32[1,1], index: 6, kind: input, shape index: {}]   ;;  %s1622_s7 = inlined_call_operand.hbm [shape: bf16[2,16,128], index: 7, kind: output, shape index: {0}]   ;;  %s1623_s8 = inlined_call_operand.hbm [shape: f32[2,1,128], index: 8, kind: output, shape index: {1}]  }
   0x1   :  { %1630 = sst [smem:[#allocation21_spill]] %s1616_s1  ;;  %v14_v0 = vstv %s1621_s6 }
   0x2   :  { %1631 = sst [smem:[#allocation22_spill]] %s1618_s3  ;;  %15 = vst [vmem:[#allocation6] sm:$0x1] %v14_v0 }
   0x3   :  { %16 = vsyncpa [#allocation8], 0 }
   0x4   :  { %18 = vsyncpa [#allocation8 + $0x1], 0 }
   0x5   :  { %19 = vsyncpa [#allocation11], 0 }
   0x6   :  { %20 = vsyncpa [#allocation9], 0 }
   0x7   :  { %22 = vsyncpa [#allocation9 + $0x1], 0 }
   0x8   :  { %23 = vsyncpa [#allocation15], 0 }
   0x9   :  { %25 = vsyncpa [#allocation15 + $0x1], 0  ;;  %s1353_s29 = smov 0   ;;  %s1355_s30 = smov 0  }
   0xa   :  { %s1357_s9 = smov 0   ;;  %s1359_s10 = smov 0  }
   0xb   :  { %s1361_s11 = smov 0   ;;  %s1363_s12 = smov 0  }
   0xc LB: > { %s900_s6 = sadd.s32 4294967295, %s1288_s12   ;;  %s901_s13 = sadd.s32 4294967294, %s1288_s12   ;;  %s1288_s12 = sphi %s1363_s12, %s31_s12   ;;  %s1284_s11 = sphi %s1361_s11, %s1654_s11   ;;  %s1280_s10 = sphi %s1359_s10, %s1653_s10   ;;  %s1276_s9 = sphi %s1357_s9, %s1652_s9   ;;  %s1272_s30 = sphi %s1355_s30, %s1651_s30   ;;  %s1268_s29 = sphi %s1353_s29, %s1650_s29  }
   0xd   : > { %p72_p0 = scmp.ne.s32.totalorder %s1272_s30, %s1268_s29  ;;  %p1387_p1 = scmp.eq.s32.totalorder %s900_s6, 0 }
   0xe   : > { %p1391_p2 = scmp.eq.s32.totalorder %s900_s6, 1  ;;  %p240_p3 = scmp.eq.s32.totalorder %s901_s13, 1 }
   0xf   : > { %s1632_s14 = scalar_select %p1387_p1, 1, 0 }
  0x10   : > { %p1397_p4 = por %p1387_p1, %p72_p0  ;;  %p902_p5 = scmp.ge.s32.totalorder %s1288_s12, 1 }
  0x11   : > { %p1402_p6 = por %p240_p3, %p72_p0  ;;  %p273_p7 = scmp.lt.s32.totalorder %s1288_s12, 3 }
  0x12   : > { %s1634_s16 = scalar_select %p1397_p4, 1, 0 }
  0x13   : > { %s1635_s17 = scalar_select %p1402_p6, 1, 0 }
  0x14   : > { %p1407_p8 = pnand %p902_p5, %p273_p7  ;;  %s1290_s19 = smov [#allocation10]  }
  0x15   : > { %s287_s20 = sshll.u32 %s1290_s19, 4  ;;  %s1291_s22 = smov [#allocation12]   ;;  %s288_s20 = int_to_ptr.vmem [resolvable:$true] %s287_s20 }
  0x16   : > { %p992_p9 = pneg %p1407_p8  ;;  %s306_s23 = sshll.u32 %s1291_s22, 4  ;;  %s307_s23 = int_to_ptr.vmem [resolvable:$true] %s306_s23 }
  0x17   : > { %s1105_s24 = scalar_lea.vmem %s288_s20, 256  ;;  %p1113_p5 = scmp.lt.s32.totalorder %s288_s20, %s288_s20 }
  0x18   : > { %p1416_p11 = pnand %p992_p9, %p1387_p1  ;;  %p1106_p13 = scmp.ne.s32.totalorder %s288_s20, %s1105_s24 }
  0x19   : > { %p1114_p7 = scmp.lt.s32.totalorder %s1105_s24, %s1105_s24 }
  0x1a   : > { %p1096_p12 = pneg %p1416_p11 }
  0x1b   : > { %p1115_p10 = por %p1114_p7, %p1113_p5 }
  0x1c   : > { %p1108_p0 = pnand %p1106_p13, %p1096_p12 }
  0x1e   : > { %p1109_p3 = pneg %p1108_p0 }
  0x20   : > { %p1116_p9 = pnand %p1115_p10, %p1109_p3 }
  0x22   : > { %1119 = shalt.err (!%p1116_p9)
}
  0x23   : > { %s1292_s25 = smov 64   ;;  %s1293_s26 = smov 4  }
  0x24   : > { %s1638_s1 = sld [smem:[#allocation21_spill]]  ;;  %s1131_s6 = scalar_lea.vmem %s307_s23, 512 }
  0x25   : > { %p1132_p6 = scmp.ne.s32.totalorder %s307_s23, %s1131_s6  ;;  %p1139_p1 = scmp.lt.s32.totalorder %s307_s23, %s307_s23 }
  0x26   : > { %p1140_p4 = scmp.lt.s32.totalorder %s1131_s6, %s1131_s6 }
  0x27   : > { %p1134_p13 = pnand %p1132_p6, %p1096_p12 }
  0x28   : > { %p1141_p5 = por %p1140_p4, %p1139_p1 }
  0x29   : > { %p1135_p0 = pneg %p1134_p13 }
  0x2a   : > { %995 = dma.hbm_to_vmem [thread:$0]  (!%p1416_p11), %s1638_s1, 256, %s288_s20, [#allocation11], %s1292_s25, %s1292_s25, %s1293_s26  }
  0x2b   : > { %p1142_p10 = pnand %p1141_p5, %p1135_p0 }
  0x2d   : > { %1145 = shalt.err (!%p1142_p10)
}
  0x2e   : > { %s1627_s13 = smov 128   ;;  %s1628_s19 = smov 8  }
  0x2f   : > { %s1639_s3 = sld [smem:[#allocation22_spill]]  ;;  %s50_s24 = sadd.s32 1, %s1284_s11 }
  0x30   : > { %s59_s25 = sadd.s32 1, %s1276_s9  ;;  %p52_p1 = scmp.ge.s32.totalorder %s50_s24, 2 }
  0x31   : > { %p66_p4 = scmp.ne.s32.totalorder %s1276_s9, %s1272_s30  ;;  %p67_p6 = scmp.eq.s32.totalorder %s1288_s12, 0 }
  0x32   : > { %p1012_p12 = scmp.lt.s32.totalorder %s1288_s12, 2  ;;  %s1656_s24 = smov (%p52_p1, %s50_s24), 0 }
  0x33   : > { %1640 = sst [smem:[#allocation20_spill]] %s1656_s24  ;;  %p68_p3 = por %p67_p6, %p66_p4 }
  0x34   : > { %p1451_p7 = por %p1391_p2, %p66_p4  ;;  %s54_s26 = ssub.s32 %s1284_s11, %s1656_s24 }
  0x35   : > { %998 = dma.hbm_to_vmem [thread:$0]  (!%p1416_p11), %s1639_s3, 512, %s307_s23, [#allocation11], %s1627_s13, %s1627_s13, %s1628_s19  }
  0x36   : > { %s329_s27 = sand.u32 1, %s1276_s9   ;;  %p57_p9 = scmp.eq.s32.totalorder %s54_s26, 0 }
  0x37   : > { %s907_s23 = sshll.u32 %s329_s27, 4  ;;  %s931_s28 = sshll.u32 %s1284_s11, 8 }
  0x38   : > { %s1460_s6 = scalar_select %p57_p9, %s1276_s9, %s59_s25  }
  0x39   : > { %s341_s13 = scalar_lea.hbm %s1615_s0, %s931_s28  ;;  %s333_s19 = scalar_lea.vmem [#allocation7], %s907_s23 }
  0x3a   : > { %s342_s1 = sshll.u32 %s333_s19, 4  ;;  %p1467_p11 = pnand %p1012_p12, %p68_p3  ;;  %s343_s1 = int_to_ptr.vmem [resolvable:$true] %s342_s1 }
  0x3b   : > { %s330_s3 = scalar_lea.sflag [#allocation8], %s329_s27  ;;  %s1159_s26 = scalar_lea.vmem %s343_s1, 256 }
  0x3c   : > { %p1148_p2 = pneg %p1467_p11  ;;  %p1160_p13 = scmp.ne.s32.totalorder %s343_s1, %s1159_s26 }
  0x3d   : > { %s1296_s25 = smov [#allocation7]  }
  0x3e   : > { %p1162_p0 = pnand %p1160_p13, %p1148_p2  ;;  %s1164_s24 = sshll.u32 %s1296_s25, 4  ;;  %s1165_s24 = int_to_ptr.vmem [resolvable:$false] %s1164_s24 }
  0x3f   : > { %s1166_s28 = scalar_lea.vmem %s1165_s24, 512  ;;  %p1167_p10 = scmp.lt.s32.totalorder %s343_s1, %s1165_s24 }
  0x40   : > { %p1163_p5 = pneg %p1162_p0  ;;  %p1168_p1 = scmp.lt.s32.totalorder %s1166_s28, %s1159_s26 }
  0x42   : > { %p1169_p4 = por %p1168_p1, %p1167_p10 }
  0x44   : > { %p1170_p6 = pnand %p1169_p4, %p1163_p5 }
  0x46   : > { %1173 = shalt.err (!%p1170_p6)
}
  0x47   : > { %s1643_s19 = smov 8   ;;  %s1644_s23 = smov 128  }
  0x48   : > { %1002 = dma.hbm_to_vmem [thread:$0]  (!%p1467_p11), %s341_s13, 256, %s343_s1, %s330_s3, %s1644_s23, %s1644_s23, %s1643_s19  }
  0x49   : > { %354 = sbr.rel (%p1407_p8) target bundleno = 899 (0x383), region = 48  ;;  %s1481_s27 = sand.u32 (!%p1407_p8), 1, %s1272_s30  }
  0x4a   : > { %s911_s24 = sshll.u32 (!%p1407_p8), %s1481_s27, 4  ;;  %s357_s20 = scalar_lea.sflag (!%p1407_p8), [#allocation8], %s1481_s27 }
  0x4b   : > { %s360_s22 = scalar_lea.vmem (!%p1407_p8), [#allocation7], %s911_s24  ;;  %p1645_p12 = scmp.ne.s32.totalorder (!%p1407_p8), %s1634_s16, 0 }
  0x4e   : > { %1251 = dma.done.wait (%p1645_p12), %s357_s20, 256  }
  0x4f   : > { %1253 = vsyncadd (%p1645_p12), %s357_s20, 4294967040  ;;  %p1646_p3 = scmp.ne.s32.totalorder %s1632_s14, 0 }
  0x51   : > { %1255 = dma.done.wait (%p1646_p3), [#allocation11], 768  }
  0x52   : > { %1257 = vsyncadd (%p1646_p3), [#allocation11], 4294966528  ;;  %vm557_vm0 = vcmask 253952   ;;  %v1297_v1 = vmov 0.0   ;;  %vm1298_vm1 = vmmov 0   ;;  %v1078_v2 = vld [vmem:[#allocation10 + $0x8] sm:$0xff]  }
  0x53   : > { %959 = vmatprep.subr.bf16.mxu0 %v1297_v1  ;;  %963 = vmatprep.mubr.msk.bf16.mxu0 %vm1298_vm1, %v1297_v1  ;;  %558 = vst.msk [vmem:[#allocation5] sm:$0x1] %vm557_vm0, %v1297_v1  ;;  %v1079_v3 = vld [vmem:[#allocation10] sm:$0xff]   ;;  %v415_v5 = vld [vmem:[%s360_s22 + $0x8] sm:$0xff]  ;;  %vm440_vm2 = vcmask 261120   ;;  %vm489_vm3 = vcmask 7168  }
  0x54   : > { %967 = vmatprep.subr.mxu1 %v1297_v1  ;;  %975 = vmatprep.mubr.msk.f32.mxu1 %vm1298_vm1, %v1297_v1  ;;  %v414_v4 = vld [vmem:[%s360_s22] sm:$0xff]  ;;  %v564_v7 = vsel %vm440_vm2, %v415_v5, 0.0  ;;  %v618_v18 = vld [vmem:[#allocation12 + $0x18] sm:$0xff]  ;;  %v1299_v21 = vmov -1e+30   ;;  %492 = vst.msk [vmem:[#allocation4] sm:$0xff] %vm489_vm3, %v1297_v1 }
  0x55   : > { %960 = vmatpush3.bf16.msra.mxu0 %v1078_v2  ;;  %v563_v6 = vsel %vm440_vm2, %v414_v4, 0.0  ;;  %v416_v9 = vpack.c.bf16 %v415_v5, %v414_v4  ;;  %v617_v19 = vld [vmem:[#allocation12 + $0x10] sm:$0xff]  ;;  %968 = vmatpush3.msra.mxu1 %v618_v18  ;;  %490 = vst.msk [vmem:[#allocation3] sm:$0xff] %vm489_vm3, %v1299_v21  ;;  %491 = vst.msk [vmem:[#allocation3 + $0x8] sm:$0xff] %vm489_vm3, %v1299_v21  ;;  %v616_v22 = vld [vmem:[#allocation12 + $0x8] sm:$0xff]  ;;  %v1300_v32 = vmov 0  }
  0x56   : > { %961 = vmatprep.subr.bf16.mxu0 %v1297_v1  ;;  %v565_v8 = vadd.f32 %v564_v7, %v563_v6  ;;  %493 = vst.msk [vmem:[#allocation4 + $0x8] sm:$0xff] %vm489_vm3, %v1297_v1  ;;  %969 = vmatprep.subr.mxu1 %v1297_v1  ;;  %v615_v23 = vld [vmem:[#allocation12] sm:$0xff]  ;;  %v915_v25 = vld [vmem:[%s1617_s2] ss:$0 sm:$0xff]  ;;  %vm702_vm5 = vcmask 516096   ;;  %s914_s15 = sshll.u32 %s1481_s27, 3 }
  0x57   : > { %970 = vmatpush3.msra.mxu1 %v617_v19  ;;  %1076 = vset.pattern.permute.xlu1 %v1300_v32  ;;  %v619_v43 = vld [vmem:[%s1619_s4] sm:$0x1]  ;;  %s407_s26 = scalar_lea.vmem [#allocation14], %s1481_s27  ;;  %s928_s28 = sshll.u32 %s1280_s10, 4 }
  0x58   : > { %v566_v10 = vrot.slane %v565_v8, 4  ;;  %971 = vmatprep.subr.mxu1 %v1297_v1  ;;  %1077 = vset.pattern.permute.xlu0 %v1300_v32  ;;  %v700_v57 = vld [vmem:[%s1620_s5] sm:$0x1]  ;;  %s750_s25 = sshll.u32 %s407_s26, 4  ;;  %s1529_s19 = scalar_lea.vmem [#allocation13], %s914_s15  ;;  %s1532_s25 = int_to_ptr.vmem [resolvable:$true] %s750_s25 }
  0x59   : > { %962 = vmatpush3.bf16.msra.mxu0 %v1079_v3  ;;  %972 = vmatpush3.msra.mxu1 %v616_v22  ;;  %s734_s23 = sshll.u32 %s1529_s19, 4  ;;  %s936_s24 = sshll.u32 %s1280_s10, 7  ;;  %s1540_s23 = int_to_ptr.vmem [resolvable:$true] %s734_s23 }
  0x5a   : > { %v567_v11 = vadd.f32 %v566_v10, %v565_v8  ;;  %v562_v15 = vld [vmem:[#allocation5] sm:$0x1]  ;;  %973 = vmatprep.subr.mxu1 %v1297_v1  ;;  %s1538_s1 = scalar_lea.hbm %s1623_s8, %s928_s28  ;;  %s1545_s16 = scalar_lea.hbm %s1622_s7, %s936_s24 }
  0x5b   : > { %974 = vmatpush3.msra.mxu1 %v615_v23  ;;  %v502_v1 = vld [vmem:[#allocation4] sm:$0xff]  ;;  %s720_s10 = scalar_lea.sflag [#allocation15], %s1481_s27  ;;  %s1174_s18 = scalar_lea.vmem %s1532_s25, 16 }
  0x5c   : > { %964 = vmatmul.mubr.msk.bf16.vlgmr.msra.gmra.mxu0 %vm440_vm2, %v416_v9  ;;  %v568_v12 = vrot.slane %v567_v11, 2  ;;  %v494_v33 = vld [vmem:[#allocation3] sm:$0xff]  ;;  %v495_v36 = vld [vmem:[#allocation3 + $0x8] sm:$0xff]  ;;  %p1175_p8 = scmp.ne.s32.totalorder %s1532_s25, %s1174_s18  ;;  %s1301_s13 = smov [#allocation14]  }
  0x5d   : > { %v503_v5 = vld [vmem:[#allocation4 + $0x8] sm:$0xff]  ;;  %s1178_s15 = sshll.u32 %s1301_s13, 4  ;;  %s1179_s15 = int_to_ptr.vmem [resolvable:$false] %s1178_s15 }
  0x5e   : > { %v569_v13 = vadd.f32 %v568_v12, %v567_v11  ;;  %p1176_p9 = pnand %p1175_p8, %p1451_p7  ;;  %s1180_s28 = scalar_lea.vmem %s1179_s15, 32 }
  0x5f   : > { %p1181_p2 = scmp.lt.s32.totalorder %s1532_s25, %s1179_s15  ;;  %p1182_p13 = scmp.lt.s32.totalorder %s1180_s28, %s1174_s18 }
  0x60   : > { %v570_v14 = vrot.slane %v569_v13, 1  ;;  %p1177_p11 = pneg %p1176_p9 }
  0x61   : > { %p1183_p0 = por %p1182_p13, %p1181_p2 }
  0x62   : > { %v571_v16 = vadd.f32 %v570_v14, %v569_v13 }
  0x63   : > { %p1184_p5 = pnand %p1183_p0, %p1177_p11 }
  0x64   : > { %v572_v17 = vadd.f32 %v571_v16, %v562_v15 }
  0x66   : > { %574 = vst.msk [vmem:[#allocation5] sm:$0x1] %vm557_vm0, %v572_v17  ;;  %v706_v17 = vld [vmem:[#allocation6] sm:$0x1] }
  0x6d   : > { %v613_v20 = vld [vmem:[#allocation5] sm:$0x1] }
  0x6e   : > { %v614_v24 = vmul.f32 0.125, %v613_v20 }
  0x70   : > { %976 = vmatmul.mubr.msk.f32.vlgmr.msra.gmra.mxu1 %vm440_vm2, %v614_v24 }
 0x11c   : > { %v478_v26 = vpop.f32.mrf.mxu0 }
 0x11d   : > { %v1506_v27 = vadd.f32 %v915_v25, %v478_v26 }
 0x11e   : > { %v965_v28 = vpop.f32.mrf.mxu0 }
 0x11f   : > { %496 = vmax.xlane.f32.xlu0 %v1506_v27 }
 0x120   : > { %v481_v29 = vpop.f32.mrf.mxu0 }
 0x121   : > { %v1509_v30 = vadd.f32 %v915_v25, %v481_v29 }
 0x122   : > { %v966_v31 = vpop.f32.mrf.mxu0 }
 0x123   : > { %498 = vmax.xlane.f32.xlu0 %v1509_v30  ;;  %v940_v23 = vpack.c.bf16 %v1509_v30, %v1506_v27 }
 0x125   : > { %v944_v25 = vunpack.c.l.bf16 %v940_v23  ;;  %v945_v26 = vunpack.c.h.bf16 %v940_v23 }
 0x130   : > { %v689_v37 = vpop.f32.mrf.mxu1 }
 0x131   : > { %v690_v44 = vadd.f32 %v689_v37, %v619_v43 }
 0x132   : > { %v977_v40 = vpop.f32.mrf.mxu1 }
 0x133   : > { %v694_v45 = vmul.f32 1.442695, %v690_v44  ;;  %vm693_vm4 = vcmp.gt.f32.partialorder %v690_v44, 0.0 }
 0x135   : > { %1080 = vpow2.f32 %v694_v45 }
 0x142   : > { %v1081_v46 = vpop.eup %1080 }
 0x143   : > { %v924_v49 = vadd.f32 -1.0, %v1081_v46 }
 0x145   : > { %v697_v53 = vmul.f32 1.6732632, %v924_v49 }
 0x147   : > { %v698_v55 = vsel %vm693_vm4, %v690_v44, %v697_v53 }
 0x148   : > { %v699_v56 = vmul.f32 1.050701, %v698_v55 }
 0x14a   : > { %v701_v58 = vmul.f32 %v700_v57, %v699_v56 }
 0x14c   : > { %v703_v60 = vsel %vm702_vm5, %v701_v58, 0.0 }
 0x1a8   : > { %v497_v34 = vpop.xlane.xlu0 %496 }
 0x1a9   : > { %v500_v35 = vmax.f32 %v494_v33, %v497_v34 }
 0x1ab   : > { %v504_v38 = vsub.f32 %v494_v33, %v500_v35  ;;  %537 = vst.msk [vmem:[#allocation3] sm:$0xff] %vm489_vm3, %v500_v35  ;;  %514 = vperm.xlu1 %1076, %v500_v35  }
 0x1ac   : > { %v499_v39 = vpop.xlane.xlu0 %498 }
 0x1ad   : > { %v501_v41 = vmax.f32 %v495_v36, %v499_v39  ;;  %v506_v62 = vmul.f32 1.442695, %v504_v38 }
 0x1af   : > { %v505_v42 = vsub.f32 %v495_v36, %v501_v41  ;;  %538 = vst.msk [vmem:[#allocation3 + $0x8] sm:$0xff] %vm489_vm3, %v501_v41  ;;  %519 = vperm.xlu1 %1076, %v501_v41  }
 0x1b1   : > { %v508_v63 = vmul.f32 1.442695, %v505_v42 }
 0x1b2   : > { %v575_v14 = vld [vmem:[#allocation3] sm:$0xff] }
 0x1b6   : > { %v576_v20 = vld [vmem:[#allocation3 + $0x8] sm:$0xff] }
 0x226   : > { %v515_v47 = vpop.permute.xlu1 %514 }
 0x227   : > { %v522_v48 = vsub.f32 %v1506_v27, %v515_v47 }
 0x229   : > { %v524_v50 = vmul.f32 1.442695, %v522_v48 }
 0x22a   : > { %v520_v51 = vpop.permute.xlu1 %519 }
 0x22b   : > { %1082 = vpow2.f32 %v524_v50  ;;  %v523_v52 = vsub.f32 %v1509_v30, %v520_v51 }
 0x22d   : > { %v526_v54 = vmul.f32 1.442695, %v523_v52 }
 0x22f   : > { %1084 = vpow2.f32 %v526_v54 }
 0x230   : > { %1086 = vpow2.f32 %v506_v62 }
 0x231   : > { %1088 = vpow2.f32 %v508_v63 }
 0x238   : > { %v1083_v59 = vpop.eup %1082 }
 0x239   : > { %528 = vadd.xlane.f32.xlu0 %v1083_v59 }
 0x23c   : > { %v1085_v61 = vpop.eup %1084 }
 0x23d   : > { %530 = vadd.xlane.f32.xlu1 %v1085_v61  ;;  %704 = vadd.xlane.f32.xlu0 %v703_v60  ;;  %v1087_v0 = vpop.eup %1086 }
 0x23e   : > { %v510_v2 = vmul.f32 %v1087_v0, %v502_v1  ;;  %v1089_v3 = vpop.eup %1088 }
 0x23f   : > { %v511_v7 = vmul.f32 %v1089_v3, %v503_v5 }
 0x2c2   : > { %v529_v4 = vpop.xlane.xlu0 %528 }
 0x2c3   : > { %v532_v6 = vadd.f32 %v529_v4, %v510_v2 }
 0x2c5   : > { %535 = vst.msk [vmem:[#allocation4] sm:$0xff] %vm489_vm3, %v532_v6 }
 0x2c6   : > { %v531_v8 = vpop.xlane.xlu1 %530  ;;  %v705_v18 = vpop.xlane.xlu0 %704 }
 0x2c7   : > { %v533_v9 = vadd.f32 %v531_v8, %v511_v7  ;;  %v707_v21 = vadd.f32 %v706_v17, %v705_v18 }
 0x2c9   : > { %536 = vst.msk [vmem:[#allocation4 + $0x8] sm:$0xff] %vm489_vm3, %v533_v9 }
 0x2cc   : > { %v577_v10 = vld [vmem:[#allocation4] sm:$0xff] }
 0x2cd   : > { %1090 = vlog2.f32 %v577_v10 }
 0x2d0   : > { %v578_v11 = vld [vmem:[#allocation4 + $0x8] sm:$0xff] }
 0x2d1   : > { %1092 = vlog2.f32 %v578_v11 }
 0x2da   : > { %v1091_v12 = vpop.eup %1090 }
 0x2db   : > { %v580_v13 = vmul.f32 0.6931472, %v1091_v12 }
 0x2dd   : > { %v583_v15 = vadd.f32 %v580_v13, %v575_v14 }
 0x2de   : > { %v1093_v16 = vpop.eup %1092 }
 0x2df   : > { %591 = vperm.xlu0 %1077, %v583_v15   ;;  %v582_v19 = vmul.f32 0.6931472, %v1093_v16 }
 0x2e1   : > { %v584_v22 = vadd.f32 %v582_v19, %v576_v20 }
 0x2e3   : > { %596 = vperm.xlu1 %1076, %v584_v22   ;;  %710 = vperm.xlu0 %1077, %v707_v21  }
 0x35a   : > { %v592_v24 = vpop.permute.xlu0 %591 }
 0x35b   : > { %v599_v29 = vsub.f32 %v944_v25, %v592_v24 }
 0x35e   : > { %v597_v27 = vpop.permute.xlu1 %596  ;;  %v711_v28 = vpop.permute.xlu0 %710 }
 0x35f   : > { %v600_v30 = vsub.f32 %v945_v26, %v597_v27  ;;  %713 = vst [vmem:[%s407_s26] sm:$0x1] %v711_v28 }
 0x360   : > { %1187 = shalt.err (!%p1184_p5)
}
 0x361   : > { %s1188_s26 = scalar_lea.hbm %s1538_s1, 16  ;;  %s1192_s22 = scalar_lea.hbm %s1623_s8, 32 }
 0x362   : > { %p1189_p10 = scmp.ne.s32.totalorder %s1538_s1, %s1188_s26  ;;  %p1193_p6 = scmp.lt.s32.totalorder %s1538_s1, %s1623_s8 }
 0x363   : > { %p1194_p12 = scmp.lt.s32.totalorder %s1192_s22, %s1188_s26 }
 0x364   : > { %p1190_p1 = pnand %p1189_p10, %p1451_p7 }
 0x365   : > { %p1195_p3 = por %p1194_p12, %p1193_p6 }
 0x366   : > { %p1191_p4 = pneg %p1190_p1 }
 0x368   : > { %p1196_p8 = pnand %p1195_p3, %p1191_p4 }
 0x36a   : > { %1199 = shalt.err (!%p1196_p8)
}
 0x36b   : > { %989 = dma.vmem_to_hbm [thread:$0]  (%p1451_p7), %s1532_s25, 16, %s1538_s1, %s720_s10   ;;  %v949_v31 = vpack.c.bf16 %v600_v30, %v599_v29 }
 0x36c   : > { %s715_s18 = scalar_lea.sflag [#allocation9], %s1481_s27  ;;  %s1200_s13 = scalar_lea.vmem %s1540_s23, 128 }
 0x36d   : > { %950 = vst [vmem:[%s1529_s19] sm:$0xff] %v949_v31   ;;  %p1201_p9 = scmp.ne.s32.totalorder %s1540_s23, %s1200_s13  ;;  %s1302_s15 = smov [#allocation13]  }
 0x36e   : > { %s1204_s28 = sshll.u32 %s1302_s15, 4  ;;  %s1205_s28 = int_to_ptr.vmem [resolvable:$false] %s1204_s28 }
 0x36f   : > { %p1202_p11 = pnand %p1201_p9, %p1451_p7  ;;  %s1206_s26 = scalar_lea.vmem %s1205_s28, 256 }
 0x370   : > { %p1207_p13 = scmp.lt.s32.totalorder %s1540_s23, %s1205_s28  ;;  %p1208_p0 = scmp.lt.s32.totalorder %s1206_s26, %s1200_s13 }
 0x371   : > { %p1203_p2 = pneg %p1202_p11 }
 0x372   : > { %p1209_p5 = por %p1208_p0, %p1207_p13 }
 0x374   : > { %p1210_p10 = pnand %p1209_p5, %p1203_p2 }
 0x376   : > { %1213 = shalt.err (!%p1210_p10)
}
 0x377   : > { %s1214_s25 = scalar_lea.hbm %s1545_s16, 128  ;;  %s1218_s10 = scalar_lea.hbm %s1622_s7, 256 }
 0x378   : > { %p1215_p1 = scmp.ne.s32.totalorder %s1545_s16, %s1214_s25  ;;  %p1219_p12 = scmp.lt.s32.totalorder %s1545_s16, %s1622_s7 }
 0x379   : > { %p1220_p3 = scmp.lt.s32.totalorder %s1218_s10, %s1214_s25 }
 0x37a   : > { %p1216_p4 = pnand %p1215_p1, %p1451_p7 }
 0x37b   : > { %p1221_p8 = por %p1220_p3, %p1219_p12 }
 0x37c   : > { %p1217_p6 = pneg %p1216_p4 }
 0x37e   : > { %p1222_p9 = pnand %p1221_p8, %p1217_p6 }
 0x380   : > { %1225 = shalt.err (!%p1222_p9)
}
 0x381   : > { %s1303_s22 = smov 64   ;;  %s1304_s3 = smov 4  }
 0x382   : > { %988 = dma.vmem_to_hbm [thread:$0]  (%p1451_p7), %s1540_s23, 128, %s1545_s16, %s715_s18, %s1303_s22, %s1303_s22, %s1304_s3  }
 0x383 PF: > { %s762_s14 = sand.u32 1, %s1268_s29   ;;  %p1647_p11 = scmp.ne.s32.totalorder %s1635_s17, 0 }
 0x384   : > { %p1648_p2 = scmp.ge.s32.totalorder %s1288_s12, 2  ;;  %s763_s13 = scalar_lea.sflag [#allocation9], %s762_s14 }
 0x386   : > { %p1004_p13 = pnand %p1648_p2, %p1647_p11 }
 0x388   : > { %p1005_p0 = pneg %p1004_p13 }
 0x38a   : > { %1259 = dma.done.wait (%p1005_p0), %s763_s13, 128  }
 0x38b   : > { %1261 = vsyncadd (%p1005_p0), %s763_s13, 4294967168  ;;  %s772_s15 = scalar_lea.sflag [#allocation15], %s762_s14 }
 0x38c   : > { %1263 = dma.done.wait (%p1005_p0), %s772_s15, 16  }
 0x38d   : > { %1265 = vsyncadd (%p1005_p0), %s772_s15, 4294967280  ;;  %s31_s12 = sadd.s32 1, %s1288_s12   ;;  %s1649_s21 = sld [smem:[#allocation20_spill]] }
 0x38e   : > { %p28_p5 = scmp.ge.s32.totalorder %s31_s12, 4   ;;  %s1650_s29 = smov %s1272_s30 }
 0x38f   : > { %s1651_s30 = smov %s1276_s9  ;;  %s1652_s9 = smov %s1460_s6 }
 0x390   : > { %s1653_s10 = smov %s1284_s11  ;;  %30 = sbr.rel (!%p28_p5) target bundleno = 12 (0xc), region = 139 }
 0x393   : > { %s1654_s11 = smov %s1649_s21 }
 0x395   :  { %776 = vsyncpa [#allocation8], 1 }
 0x396   :  { %778 = vsyncpa [#allocation8 + $0x1], 1 }
 0x397   :  { %779 = vsyncpa [#allocation11], 1 }
 0x398   :  { %780 = vsyncpa [#allocation9], 1 }
 0x399   :  { %782 = vsyncpa [#allocation9 + $0x1], 1 }
 0x39a   :  { %783 = vsyncpa [#allocation15], 1 }
 0x39b   :  { %785 = vsyncpa [#allocation15 + $0x1], 1 }

</bundles_post_ra>
